<compile_context>
chip_gen: v6e
topology: v6e:2x2x1
jax: 0.10.0
libtpu: 0.0.40
codegen_flags: <defaults>
</compile_context>

<pallas_src>
import jax
import jax.numpy as jnp
from jax.experimental import pallas as pl
from jax.experimental.pallas import tpu as pltpu


# ---------------- pass 1a: global average pool (streams x once) --------------

def _pool_kernel(x_ref, o_ref):
    # x_ref: (row_tile, HW)   o_ref: (row_tile, 1)
    # Full-HW blocks keep the mean exact (no cross-tile accumulation needed).
    x = x_ref[...].astype(jnp.float32)
    o_ref[...] = jnp.mean(x, axis=-1, keepdims=True)


# ---------------- pass 1b: tiny batched FC gate -------------------------------

def _gate_fc_kernel(p_ref, w1_ref, w2_ref, s_ref):
    # p_ref: (B, C)  w1: (C, C//r)  w2: (C//r, C)  s_ref: (B, C)
    # One batched (B,C)@(C,Cr) matmul instead of B separate M=1 MXU passes.
    h = jnp.maximum(
        jnp.dot(p_ref[...], w1_ref[...], preferred_element_type=jnp.float32), 0.0)
    s_ref[...] = jax.nn.sigmoid(
        jnp.dot(h, w2_ref[...], preferred_element_type=jnp.float32))


# ---------------- pass 2: streaming channel rescale ---------------------------

def _rescale_kernel(x_ref, s_ref, o_ref):
    # x_ref: (row_tile, hw_tile)   s_ref: (row_tile, 1)   o_ref: (row_tile, hw_tile)
    # Pure vld + vmul + vst; the (row,1) gate broadcasts over lanes.
    o_ref[...] = x_ref[...] * s_ref[...]


# ---------------- wrapper ------------------------------------------------------

def _pick_row_tile(total_rows, bytes_per_row, target_bytes):
    """Largest row count (full extent, or multiple of 8) whose tile fits the budget."""
    if total_rows * bytes_per_row <= target_bytes:
        return int(total_rows)
    rows = max(8, (target_bytes // bytes_per_row) // 8 * 8)
    return int(min(rows, max(8, (total_rows // 8) * 8)))


def se_block(x_nchw, w1, w2):
    """x_nchw: (B, C, H, W).
    w1: (C, C//r) = fc[0].weight.T   (PyTorch Linear stores (out, in))
    w2: (C//r, C) = fc[2].weight.T
    """
    B, C, H, W = x_nchw.shape
    HW = H * W
    Cr = w1.shape[1]
    BC = B * C
    itemsize = jnp.dtype(x_nchw.dtype).itemsize
    x = x_nchw.reshape(BC, HW)

    # ---- pass 1a: pooled[b*C + c] = mean over HW.  Full-HW blocks => exact mean.
    # ~2 MiB per input tile, double-buffered -> well inside v5e/v7x scoped VMEM.
    pr = _pick_row_tile(BC, HW * itemsize, target_bytes=2 << 20)
    pooled = pl.pallas_call(
        _pool_kernel,
        out_shape=jax.ShapeDtypeStruct((BC, 1), jnp.float32),
        grid_spec=pltpu.PrefetchScalarGridSpec(
            num_scalar_prefetch=0,
            grid=(pl.cdiv(BC, pr),),
            in_specs=[pl.BlockSpec((pr, HW), lambda i: (i, 0))],
            out_specs=pl.BlockSpec((pr, 1), lambda i: (i, 0)),
        ),
        compiler_params=pltpu.CompilerParams(dimension_semantics=("parallel",)),
    )(x)

    # ---- pass 1b: gate, batched over B in a single small call (few KFLOPs).
    s = pl.pallas_call(
        _gate_fc_kernel,
        out_shape=jax.ShapeDtypeStruct((B, C), jnp.float32),
        grid_spec=pltpu.PrefetchScalarGridSpec(
            num_scalar_prefetch=0,
            grid=(1,),
            in_specs=[
                pl.BlockSpec((B, C), lambda i: (0, 0)),
                pl.BlockSpec((C, Cr), lambda i: (0, 0)),
                pl.BlockSpec((Cr, C), lambda i: (0, 0)),
            ],
            out_specs=pl.BlockSpec((B, C), lambda i: (0, 0)),
        ),
        compiler_params=pltpu.CompilerParams(dimension_semantics=("arbitrary",)),
    )(pooled.reshape(B, C), w1, w2)

    # ---- pass 2: out = x * s, streamed with lane-dense tiles.
    # Gate is cast to x.dtype once, so the hot loop has no per-tile casts.
    # (If activations are bf16 on v6e/v7x this halves HBM traffic; on v5e
    #  upcasting inside the kernel would be preferable for bf16 inputs.)
    s_col = s.reshape(BC, 1).astype(x.dtype)

    if HW % 128 == 0:
        hw_tile = min(HW, 1024)        # lane-dense, multiple of 128
    else:
        hw_tile = HW                   # full extent keeps the block legal
    rr = _pick_row_tile(BC, hw_tile * itemsize, target_bytes=1 << 20)

    out = pl.pallas_call(
        _rescale_kernel,
        out_shape=jax.ShapeDtypeStruct((BC, HW), x.dtype),
        grid_spec=pltpu.PrefetchScalarGridSpec(
            num_scalar_prefetch=0,
            grid=(pl.cdiv(BC, rr), pl.cdiv(HW, hw_tile)),
            in_specs=[
                pl.BlockSpec((rr, hw_tile), lambda i, j: (i, j)),
                pl.BlockSpec((rr, 1), lambda i, j: (i, 0)),
            ],
            out_specs=pl.BlockSpec((rr, hw_tile), lambda i, j: (i, j)),
        ),
        compiler_params=pltpu.CompilerParams(
            dimension_semantics=("parallel", "parallel")),
    )(x, s_col)

    return out.reshape(B, C, H, W)


def se_block_ref(x, w1, w2):
    # Pure-JAX reference mirroring the PyTorch forward.
    pooled = jnp.mean(x, axis=(2, 3))                        # (B, C)
    h = jnp.maximum(pooled @ w1, 0.0)
    s = jax.nn.sigmoid(h @ w2)
    return x * s[:, :, None, None]


if __name__ == "__main__":
    B, C, H, W = 2, 32, 16, 16
    reduction = 16
    Cr = C // reduction

    key = jax.random.PRNGKey(0)
    kx, k1, k2 = jax.random.split(key, 3)

    x = jax.random.normal(kx, (B, C, H, W), dtype=jnp.float32)
    # Deterministic synthetic weights (Linear(bias=False) -> just weight matrices).
    w1 = jax.random.normal(k1, (C, Cr), dtype=jnp.float32) * 0.1   # fc[0].weight.T
    w2 = jax.random.normal(k2, (Cr, C), dtype=jnp.float32) * 0.1   # fc[2].weight.T

    out = jax.block_until_ready(se_block(x, w1, w2))
    ref = se_block_ref(x, w1, w2)

    assert out.shape == (B, C, H, W)
    assert jnp.allclose(out, ref, atol=1e-5, rtol=1e-5), "mismatch vs reference"

    print("KERNEL_OK")
</pallas_src>

<mosaic_0001>
module attributes {stable_mosaic.version = 11 : i64} {
  func.func @_pool_kernel(%arg0: i32, %arg1: memref<64x256xf32, #tpu.memory_space<vmem>>, %arg2: memref<64x1xf32, #tpu.memory_space<vmem>>) attributes {dimension_semantics = [#tpu.dimension_semantics<parallel>], iteration_bounds = array<i64: 1>, scalar_prefetch = 0 : i64, scratch_operands = 0 : i64, tpu.core_type = #tpu.core_type<tc>, window_params = [{transform_indices = @transform_0, window_bounds = array<i64: 64, 256>}, {transform_indices = @transform_1, window_bounds = array<i64: 64, 1>}]} {
    %c0 = arith.constant 0 : index
    %c0_0 = arith.constant 0 : index
    %0 = vector.load %arg1[%c0, %c0_0] : memref<64x256xf32, #tpu.memory_space<vmem>>, vector<64x256xf32>
    %cst = arith.constant dense<0.000000e+00> : vector<64xf32>
    %1 = vector.multi_reduction <add>, %0, %cst [1] : vector<64x256xf32> to vector<64xf32>
    %2 = vector.shape_cast %1 : vector<64xf32> to vector<64x1xf32>
    %cst_1 = arith.constant 2.560000e+02 : f32
    %3 = vector.broadcast %cst_1 : f32 to vector<64x1xf32>
    %4 = arith.divf %2, %3 : vector<64x1xf32>
    %c0_2 = arith.constant 0 : index
    %c0_3 = arith.constant 0 : index
    %5 = vector.load %arg2[%c0_2, %c0_3] : memref<64x1xf32, #tpu.memory_space<vmem>>, vector<64x1xf32>
    tpu.vector_store %arg2[%c0_2, %c0_3], %4 {strides = array<i32>} : memref<64x1xf32, #tpu.memory_space<vmem>>, vector<64x1xf32>,
    return
  }
  func.func @transform_0(%arg0: i32) -> (i32, i32) {
    %c0_i32 = arith.constant 0 : i32
    %c0_i32_0 = arith.constant 0 : i32
    return %arg0, %c0_i32 : i32, i32
  }
  func.func @transform_1(%arg0: i32) -> (i32, i32) {
    %c0_i32 = arith.constant 0 : i32
    %c0_i32_0 = arith.constant 0 : i32
    return %arg0, %c0_i32 : i32, i32
  }
}

</mosaic_0001>

<bundles_post_ra>
// kernel: tpu_custom_call.1
= control target key start
LH: loop header
LB: loop body
LE: loop exit
PB: predicated region body
PF: predicated region fallthrough
CT: control target
= control target key end

     0   :  { %6 = vsyncpa [#allocation3], 0  ;;  %s110_s6 = smov [#allocation2]   ;;  %s158_s0 = inlined_call_operand.hbm [shape: f32[64,256], index: 0, kind: input, shape index: {}]   ;;  %s159_s1 = inlined_call_operand.vmem [shape: f32[64,1], index: 1, kind: output, shape index: {}]  }
   0x1   :  { %s12_s7 = sshll.u32 %s110_s6, 4  ;;  %s13_s7 = int_to_ptr.vmem [resolvable:$true] %s12_s7 }
   0x2   :  { %s96_s8 = scalar_lea.vmem %s13_s7, 2048  ;;  %p101_p1 = scmp.lt.s32.totalorder %s13_s7, %s13_s7 }
   0x3   :  { %p97_p0 = scmp.ne.s32.totalorder %s13_s7, %s96_s8  ;;  %p102_p2 = scmp.lt.s32.totalorder %s96_s8, %s96_s8 }
   0x5   :  { %p103_p3 = por %p102_p2, %p101_p1 }
   0x7   :  { %p104_p4 = pnand %p103_p3, %p97_p0 }
   0x9   :  { %107 = shalt.err (!%p104_p4)
}
   0xa   :  { %s111_s9 = smov 256   ;;  %s112_s10 = smov 16  }
   0xb   :  { %18 = dma.hbm_to_vmem [thread:$0]  %s158_s0, 2048, %s13_s7, [#allocation3], %s111_s9, %s111_s9, %s112_s10  }
   0xc   :  { %108 = dma.done.wait [#allocation3], 2048  }
   0xd   :  { %109 = vsyncadd [#allocation3], 4294965248  ;;  %v26_v0 = vld [vmem:[#allocation2 + $0x20] sm:$0xff]  ;;  %v27_v1 = vld [vmem:[#allocation2 + $0x28] sm:$0xff]  ;;  %vm71_vm0 = vcmask 7168  }
   0xe   :  { %v22_v2 = vld [vmem:[#allocation2] sm:$0xff]  ;;  %v44_v3 = vadd.f32 %v27_v1, %v26_v0  ;;  %v23_v4 = vld [vmem:[#allocation2 + $0x8] sm:$0xff]  ;;  %v28_v5 = vld [vmem:[#allocation2 + $0x30] sm:$0xff] }
   0xf   :  { %v29_v6 = vld [vmem:[#allocation2 + $0x38] sm:$0xff]  ;;  %v38_v7 = vadd.f32 %v23_v4, %v22_v2  ;;  %v24_v8 = vld [vmem:[#allocation2 + $0x10] sm:$0xff]  ;;  %v30_v14 = vld [vmem:[#allocation2 + $0x40] sm:$0xff] }
  0x10   :  { %v25_v9 = vld [vmem:[#allocation2 + $0x18] sm:$0xff]  ;;  %45 = vadd.xlane.f32.xlu1 %v44_v3  ;;  %v47_v10 = vadd.f32 %v29_v6, %v28_v5  ;;  %v32_v12 = vld [vmem:[#allocation2 + $0x50] sm:$0xff]  ;;  %v31_v15 = vld [vmem:[#allocation2 + $0x48] sm:$0xff] }
  0x11   :  { %39 = vadd.xlane.f32.xlu0 %v38_v7  ;;  %v41_v11 = vadd.f32 %v25_v9, %v24_v8  ;;  %v33_v13 = vld [vmem:[#allocation2 + $0x58] sm:$0xff]  ;;  %v50_v17 = vadd.f32 %v31_v15, %v30_v14  ;;  %v36_v18 = vld [vmem:[#allocation2 + $0x70] sm:$0xff]  ;;  %v34_v20 = vld [vmem:[#allocation2 + $0x60] sm:$0xff] }
  0x12   :  { %v53_v16 = vadd.f32 %v33_v13, %v32_v12  ;;  %v37_v19 = vld [vmem:[#allocation2 + $0x78] sm:$0xff]  ;;  %v35_v21 = vld [vmem:[#allocation2 + $0x68] sm:$0xff] }
  0x13   :  { %v59_v22 = vadd.f32 %v37_v19, %v36_v18  ;;  %v56_v23 = vadd.f32 %v35_v21, %v34_v20 }
  0x14   :  { %48 = vadd.xlane.f32.xlu1 %v47_v10 }
  0x15   :  { %42 = vadd.xlane.f32.xlu0 %v41_v11 }
  0x18   :  { %54 = vadd.xlane.f32.xlu1 %v53_v16 }
  0x19   :  { %51 = vadd.xlane.f32.xlu0 %v50_v17 }
  0x1c   :  { %60 = vadd.xlane.f32.xlu1 %v59_v22 }
  0x1d   :  { %57 = vadd.xlane.f32.xlu0 %v56_v23 }
  0x99   :  { %v46_v24 = vpop.xlane.xlu1 %45 }
  0x9a   :  { %v65_v25 = vmul.f32 0.00390625, %v46_v24  ;;  %v40_v26 = vpop.xlane.xlu0 %39 }
  0x9b   :  { %v63_v27 = vmul.f32 0.00390625, %v40_v26 }
  0x9c   :  { %74 = vst.msk [vmem:[%s159_s1 + $0x10] sm:$0xff] %vm71_vm0, %v65_v25 }
  0x9d   :  { %72 = vst.msk [vmem:[%s159_s1] sm:$0xff] %vm71_vm0, %v63_v27  ;;  %v49_v28 = vpop.xlane.xlu1 %48 }
  0x9e   :  { %v66_v29 = vmul.f32 0.00390625, %v49_v28  ;;  %v43_v30 = vpop.xlane.xlu0 %42 }
  0x9f   :  { %v64_v31 = vmul.f32 0.00390625, %v43_v30 }
  0xa0   :  { %75 = vst.msk [vmem:[%s159_s1 + $0x18] sm:$0xff] %vm71_vm0, %v66_v29 }
  0xa1   :  { %73 = vst.msk [vmem:[%s159_s1 + $0x8] sm:$0xff] %vm71_vm0, %v64_v31  ;;  %v55_v32 = vpop.xlane.xlu1 %54 }
  0xa2   :  { %v68_v33 = vmul.f32 0.00390625, %v55_v32  ;;  %v52_v34 = vpop.xlane.xlu0 %51 }
  0xa3   :  { %v67_v35 = vmul.f32 0.00390625, %v52_v34 }
  0xa4   :  { %77 = vst.msk [vmem:[%s159_s1 + $0x28] sm:$0xff] %vm71_vm0, %v68_v33 }
  0xa5   :  { %76 = vst.msk [vmem:[%s159_s1 + $0x20] sm:$0xff] %vm71_vm0, %v67_v35  ;;  %v61_v36 = vpop.xlane.xlu1 %60 }
  0xa6   :  { %v70_v37 = vmul.f32 0.00390625, %v61_v36  ;;  %v58_v38 = vpop.xlane.xlu0 %57 }
  0xa7   :  { %v69_v39 = vmul.f32 0.00390625, %v58_v38 }
  0xa8   :  { %79 = vst.msk [vmem:[%s159_s1 + $0x38] sm:$0xff] %vm71_vm0, %v70_v37 }
  0xa9   :  { %78 = vst.msk [vmem:[%s159_s1 + $0x30] sm:$0xff] %vm71_vm0, %v69_v39 }
  0xaa   :  { %84 = vsyncpa [#allocation3], 1 }

</bundles_post_ra>
